<compile_context>
chip_gen: v7x
topology: tpu7x:2x2x1
jax: 0.10.0
libtpu: 0.0.40
codegen_flags: <defaults>
</compile_context>

<pallas_src>
import jax
import jax.numpy as jnp
from jax import lax
from jax.experimental import pallas as pl
from jax.experimental.pallas import tpu as pltpu

LANE = 128     # TPU lane width (VMEM physical padding of the last dim)
SUBLANE = 8    # f32 sublane count
HIDDEN = 8


def _mlp_kernel(x_ref, w1_ref, b1_ref, w2_ref, b2_ref, o_ref):
    # Two tiny MXU matmuls + bias + ReLU on one batch tile. MXU has huge slack here;
    # the binding resource is the HBM stream of x / out, handled by the BlockSpec pipeline.
    x = x_ref[...]                                            # (TILE_B, D)
    h = jnp.dot(x, w1_ref[...],
                preferred_element_type=jnp.float32,
                precision=lax.Precision.HIGHEST)              # (TILE_B, H) f32 acc
    h = jnp.maximum(h + b1_ref[...].astype(jnp.float32), 0.0) # bias + ReLU in f32
    y = jnp.dot(h, w2_ref[...],
                preferred_element_type=jnp.float32,
                precision=lax.Precision.HIGHEST)              # (TILE_B, O) f32 acc
    o_ref[...] = (y + b2_ref[...].astype(jnp.float32)).astype(o_ref.dtype)


def _lane_pad(n):
    return ((n + LANE - 1) // LANE) * LANE


def reading_score_forward(x, w1, b1, w2, b2, *, tile_b=4096, compute_dtype=None,
                          vmem_budget_bytes=None):
    """x: (B, input_size). w1: (input_size, 8). b1: (1, 8).
    w2: (8, output_size). b2: (1, output_size). Returns (B, output_size) in x's dtype
    (after the optional compute_dtype cast).

    compute_dtype=jnp.bfloat16 halves the two dominant HBM streams (x read, out write);
    accumulation is always f32 via preferred_element_type."""
    if compute_dtype is not None:
        x = x.astype(compute_dtype)
        w1 = w1.astype(compute_dtype)
        w2 = w2.astype(compute_dtype)
        # biases are tiny and added post-MXU in f32; keep their original dtype.

    B, D = x.shape
    H = w1.shape[1]
    O = w2.shape[1]
    out_dtype = x.dtype            # match the input dtype, like the torch module
    in_size = jnp.dtype(x.dtype).itemsize
    out_size = jnp.dtype(out_dtype).itemsize

    # --- Generation-aware VMEM budget (64 MiB physical on v7x vs 128 MiB v5e/v6e). ---
    if vmem_budget_bytes is None:
        try:
            cap = pltpu.get_tpu_info().vmem_capacity_bytes
        except Exception:
            cap = 64 << 20
        vmem_budget_bytes = min(cap // 2, 48 << 20)

    # Per-row VMEM cost: double-buffered x + out blocks (lane-padded in VMEM) plus the
    # f32 intermediates; resident params are lane-padded too but only single-buffered.
    d_v, h_v, o_v = _lane_pad(D), _lane_pad(H), _lane_pad(O)
    per_row = 2 * d_v * in_size + 2 * o_v * out_size + (h_v + o_v) * 4
    param_bytes = 2 * (D * h_v * in_size + h_v * 4 + H * o_v * in_size + o_v * 4)
    tb_cap = max(SUBLANE,
                 int((vmem_budget_bytes - param_bytes) // per_row) // SUBLANE * SUBLANE)

    # Tile: as large as budget allows (amortizes ~0.35us/step), but no larger than the
    # (sublane-rounded) batch; Pallas masks the ragged last tile's writeback.
    tb = min(tile_b, tb_cap, ((B + SUBLANE - 1) // SUBLANE) * SUBLANE)
    tb = max(SUBLANE, (tb // SUBLANE) * SUBLANE)
    grid = (pl.cdiv(B, tb),)

    # Advisory cost estimate (true, un-padded traffic: mem-bound on x read + out write).
    bytes_accessed = (B * D * in_size                       # x read
                      + B * O * out_size                    # out write
                      + (D * H + H + H * O + O) * 4)        # params (resident)
    flops = 2 * B * (D * H + H * O)

    # NOTE: weight/bias specs have constant index_maps, so they are fetched once and stay
    # VMEM-resident; depth-2 buffering on x/out is kept (deeper buffers would only shrink
    # the achievable tile; compute per tile is trivial so depth 2 already overlaps fully).
    return pl.pallas_call(
        _mlp_kernel,
        out_shape=jax.ShapeDtypeStruct((B, O), out_dtype),
        grid_spec=pltpu.PrefetchScalarGridSpec(
            num_scalar_prefetch=0,
            grid=grid,
            in_specs=[
                pl.BlockSpec((tb, D), lambda i: (i, 0)),   # x: streamed per batch tile
                pl.BlockSpec((D, H), lambda i: (0, 0)),    # w1: VMEM-resident
                pl.BlockSpec((1, H), lambda i: (0, 0)),    # b1: VMEM-resident
                pl.BlockSpec((H, O), lambda i: (0, 0)),    # w2: VMEM-resident
                pl.BlockSpec((1, O), lambda i: (0, 0)),    # b2: VMEM-resident
            ],
            # Last dim == full array dim -> legal block; HBM writeback is exactly B*O.
            out_specs=pl.BlockSpec((tb, O), lambda i: (i, 0)),
        ),
        compiler_params=pltpu.CompilerParams(
            dimension_semantics=("parallel",),             # megacore split on v7x
            vmem_limit_bytes=int(vmem_budget_bytes)),
        cost_estimate=pl.CostEstimate(
            flops=flops, transcendentals=0, bytes_accessed=bytes_accessed),
    )(x, w1, b1, w2, b2)


def init_params(key, input_size, output_size, hidden=HIDDEN):
    # Deterministic synthetic init mirroring nn.Linear shapes (kaiming-uniform-ish).
    k1, k2, k3, k4 = jax.random.split(key, 4)
    lim1 = 1.0 / jnp.sqrt(input_size)
    lim2 = 1.0 / jnp.sqrt(hidden)
    w1 = jax.random.uniform(k1, (input_size, hidden), jnp.float32, -lim1, lim1)
    b1 = jax.random.uniform(k2, (1, hidden), jnp.float32, -lim1, lim1)
    w2 = jax.random.uniform(k3, (hidden, output_size), jnp.float32, -lim2, lim2)
    b2 = jax.random.uniform(k4, (1, output_size), jnp.float32, -lim2, lim2)
    return w1, b1, w2, b2


if __name__ == "__main__":
    key = jax.random.PRNGKey(0)
    # Small shapes; batch=20 with tile_b=8 exercises the multi-tile (grid of 3) path
    # including the ragged last tile (4 valid rows, masked writeback).
    batch, input_size, output_size = 20, 16, 4

    kx, kp = jax.random.split(key)
    x = jax.random.normal(kx, (batch, input_size), jnp.float32)
    w1, b1, w2, b2 = init_params(kp, input_size, output_size)

    # Reference in plain JAX (same math as the PyTorch forward).
    ref = jnp.maximum(x @ w1 + b1, 0.0) @ w2 + b2

    # f32 path, strict tolerance (precision=HIGHEST on the dots).
    out = reading_score_forward(x, w1, b1, w2, b2, tile_b=8)
    out = jax.block_until_ready(out)
    assert out.shape == (batch, output_size)
    assert jnp.allclose(out, ref, atol=1e-5, rtol=1e-5)

    # bf16-fed production path (halves x read + out write); f32 accumulation inside.
    out_bf16 = reading_score_forward(x, w1, b1, w2, b2, compute_dtype=jnp.bfloat16)
    out_bf16 = jax.block_until_ready(out_bf16)
    assert out_bf16.shape == (batch, output_size)
    assert jnp.allclose(out_bf16.astype(jnp.float32), ref, atol=5e-2, rtol=5e-2)

    print("KERNEL_OK")
</pallas_src>

<mosaic_0001>
module attributes {stable_mosaic.version = 11 : i64} {
  func.func @_mlp_kernel(%arg0: i32, %arg1: memref<8x16xf32, #tpu.memory_space<vmem>>, %arg2: memref<16x8xf32, #tpu.memory_space<vmem>>, %arg3: memref<1x8xf32, #tpu.memory_space<vmem>>, %arg4: memref<8x4xf32, #tpu.memory_space<vmem>>, %arg5: memref<1x4xf32, #tpu.memory_space<vmem>>, %arg6: memref<8x4xf32, #tpu.memory_space<vmem>>) attributes {dimension_semantics = [#tpu.dimension_semantics<parallel>], iteration_bounds = array<i64: 3>, scalar_prefetch = 0 : i64, scratch_operands = 0 : i64, tpu.core_type = #tpu.core_type<tc>, window_params = [{transform_indices = @transform_0, window_bounds = array<i64: 8, 16>}, {pipeline_mode = #tpu.pipeline_mode<synchronous>, transform_indices = @transform_1, window_bounds = array<i64: 16, 8>}, {pipeline_mode = #tpu.pipeline_mode<synchronous>, transform_indices = @transform_2, window_bounds = array<i64: 1, 8>}, {pipeline_mode = #tpu.pipeline_mode<synchronous>, transform_indices = @transform_3, window_bounds = array<i64: 8, 4>}, {pipeline_mode = #tpu.pipeline_mode<synchronous>, transform_indices = @transform_4, window_bounds = array<i64: 1, 4>}, {transform_indices = @transform_5, window_bounds = array<i64: 8, 4>}]} {
    %c0 = arith.constant 0 : index
    %c0_0 = arith.constant 0 : index
    %0 = vector.load %arg1[%c0, %c0_0] : memref<8x16xf32, #tpu.memory_space<vmem>>, vector<8x16xf32>
    %c0_1 = arith.constant 0 : index
    %c0_2 = arith.constant 0 : index
    %1 = vector.load %arg2[%c0_1, %c0_2] : memref<16x8xf32, #tpu.memory_space<vmem>>, vector<16x8xf32>
    %cst = arith.constant dense<0.000000e+00> : vector<8x8xf32>
    %2 = tpu.matmul %0, %1, %cst {dimension_numbers = #tpu.dot_dimension_numbers<[1], [0], [0], [1], [0, 0, 1, 1], [], []>, precision = #tpu.contract_precision<fp32>} : vector<8x16xf32>, vector<16x8xf32>, vector<8x8xf32> -> vector<8x8xf32>
    %c0_3 = arith.constant 0 : index
    %c0_4 = arith.constant 0 : index
    %3 = vector.load %arg3[%c0_3, %c0_4] : memref<1x8xf32, #tpu.memory_space<vmem>>, vector<1x8xf32>
    %4 = vector.broadcast %3 : vector<1x8xf32> to vector<8x8xf32>
    %5 = arith.addf %2, %4 : vector<8x8xf32>
    %cst_5 = arith.constant 0.000000e+00 : f32
    %6 = vector.broadcast %cst_5 : f32 to vector<8x8xf32>
    %7 = arith.maximumf %5, %6 : vector<8x8xf32>
    %c0_6 = arith.constant 0 : index
    %c0_7 = arith.constant 0 : index
    %8 = vector.load %arg4[%c0_6, %c0_7] : memref<8x4xf32, #tpu.memory_space<vmem>>, vector<8x4xf32>
    %cst_8 = arith.constant dense<0.000000e+00> : vector<8x4xf32>
    %9 = tpu.matmul %7, %8, %cst_8 {dimension_numbers = #tpu.dot_dimension_numbers<[1], [0], [0], [1], [0, 0, 1, 1], [], []>, precision = #tpu.contract_precision<fp32>} : vector<8x8xf32>, vector<8x4xf32>, vector<8x4xf32> -> vector<8x4xf32>
    %c0_9 = arith.constant 0 : index
    %c0_10 = arith.constant 0 : index
    %10 = vector.load %arg5[%c0_9, %c0_10] : memref<1x4xf32, #tpu.memory_space<vmem>>, vector<1x4xf32>
    %11 = vector.broadcast %10 : vector<1x4xf32> to vector<8x4xf32>
    %12 = arith.addf %9, %11 : vector<8x4xf32>
    %c0_11 = arith.constant 0 : index
    %c0_12 = arith.constant 0 : index
    %13 = vector.load %arg6[%c0_11, %c0_12] : memref<8x4xf32, #tpu.memory_space<vmem>>, vector<8x4xf32>
    tpu.vector_store %arg6[%c0_11, %c0_12], %12 {strides = array<i32>} : memref<8x4xf32, #tpu.memory_space<vmem>>, vector<8x4xf32>,
    return
  }
  func.func @transform_0(%arg0: i32) -> (i32, i32) {
    %c0_i32 = arith.constant 0 : i32
    %c0_i32_0 = arith.constant 0 : i32
    return %arg0, %c0_i32 : i32, i32
  }
  func.func @transform_1(%arg0: i32) -> (i32, i32) {
    %c0_i32 = arith.constant 0 : i32
    %c0_i32_0 = arith.constant 0 : i32
    %c0_i32_1 = arith.constant 0 : i32
    return %c0_i32, %c0_i32_0 : i32, i32
  }
  func.func @transform_2(%arg0: i32) -> (i32, i32) {
    %c0_i32 = arith.constant 0 : i32
    %c0_i32_0 = arith.constant 0 : i32
    %c0_i32_1 = arith.constant 0 : i32
    return %c0_i32, %c0_i32_0 : i32, i32
  }
  func.func @transform_3(%arg0: i32) -> (i32, i32) {
    %c0_i32 = arith.constant 0 : i32
    %c0_i32_0 = arith.constant 0 : i32
    %c0_i32_1 = arith.constant 0 : i32
    return %c0_i32, %c0_i32_0 : i32, i32
  }
  func.func @transform_4(%arg0: i32) -> (i32, i32) {
    %c0_i32 = arith.constant 0 : i32
    %c0_i32_0 = arith.constant 0 : i32
    %c0_i32_1 = arith.constant 0 : i32
    return %c0_i32, %c0_i32_0 : i32, i32
  }
  func.func @transform_5(%arg0: i32) -> (i32, i32) {
    %c0_i32 = arith.constant 0 : i32
    %c0_i32_0 = arith.constant 0 : i32
    return %arg0, %c0_i32 : i32, i32
  }
}

</mosaic_0001>

<bundles_post_ra>
// kernel: tpu_custom_call.1
= control target key start
LH: loop header
LB: loop body
LE: loop exit
PB: predicated region body
PF: predicated region fallthrough
CT: control target
= control target key end

     0   :  { %s1412_s18 = smov 0   ;;  %s1481_s0 = inlined_call_operand.vmem [shape: f32[20,16], index: 0, kind: input, shape index: {}]   ;;  %s1482_s1 = inlined_call_operand.vmem [shape: f32[16,8], index: 1, kind: input, shape index: {}]   ;;  %s1483_s2 = inlined_call_operand.vmem [shape: f32[1,8], index: 2, kind: input, shape index: {}]   ;;  %s1484_s3 = inlined_call_operand.vmem [shape: f32[8,4], index: 3, kind: input, shape index: {}]   ;;  %s1485_s4 = inlined_call_operand.vmem [shape: f32[1,4], index: 4, kind: input, shape index: {}]   ;;  %s1486_s5 = inlined_call_operand.vmem [shape: f32[20,4], index: 5, kind: output, shape index: {}]  }
   0x1 LB: > { %s1207_s19 = sadd.s32 4294967295, %s1377_s18   ;;  %p1211_p0 = scmp.ge.s32.totalorder %s1377_s18, 1  ;;  %s1377_s18 = sphi %s1412_s18, %s15_s18  }
   0x2   : > { %p186_p1 = scmp.lt.s32.totalorder %s1377_s18, 4 }
   0x4   : > { %p187_p2 = pnand %p1211_p0, %p186_p1 }
   0x5   : > { %v221_v0 = vld [vmem:[%s1482_s1] sm:$0xff] (!%p187_p2)  ;;  %v222_v1 = vld [vmem:[%s1482_s1 + $0x8] sm:$0xff] (!%p187_p2)  ;;  %p212_p3 = scmp.lt.s32.totalorder (!%p187_p2), %s1207_s19, 2  ;;  %v1379_v2 = vmov (!%p187_p2), 0.0|0.0   ;;  %vm1380_vm0 = vmmov (!%p187_p2), 0   ;;  %v1381_v5 = vmov (!%p187_p2), 0.0  }
   0x6   : > { %190 = sbr.rel (%p187_p2) target bundleno = 550 (0x226), region = 40  ;;  %1320 = vmatprep.subr.bf16.mxu0 (!%p187_p2), %v1379_v2  ;;  %v235_v3 = vand.u32 (!%p187_p2), 4294901760, %v221_v0  ;;  %v238_v4 = vand.u32 (!%p187_p2), 4294901760, %v222_v1  ;;  %1252 = vmatprep.mubr.msk.f32.mxu0 (!%p187_p2), %vm1380_vm0, %v1381_v5  ;;  %vm230_vm1 = vcmask (!%p187_p2), 130048   ;;  %v694_v25 = vld [vmem:[%s1484_s3] sm:$0xff] (!%p187_p2)  ;;  %vm702_vm2 = vcmask (!%p187_p2), 64512  }
   0x7   : > { %1290 = vmatprep.subr.mxu1 (!%p187_p2), %v1381_v5  ;;  %1292 = vmatprep.mubr.msk.f32.mxu1 (!%p187_p2), %vm1380_vm0, %v1381_v5  ;;  %v707_v26 = vand.u32 (!%p187_p2), 4294901760, %v694_v25  ;;  %v1214_v27 = vld [vmem:[%s1483_s2] ss:$0 sm:$0xff] (!%p187_p2)  ;;  %vm1152_vm3 = vcmask (!%p187_p2), 31744  }
   0x8   : > { %v1321_v6 = vpack.c.bf16 (!%p187_p2), %v238_v4, %v235_v3  ;;  %v313_v7 = vsub.f32 (!%p187_p2), %v221_v0, %v235_v3  ;;  %v320_v8 = vsub.f32 (!%p187_p2), %v222_v1, %v238_v4  ;;  %v1215_v42 = vld [vmem:[%s1485_s4] ss:$0 sm:$0xff] (!%p187_p2) }
   0x9   : > { %1291 = vmatpush3.msra.mxu1 (!%p187_p2), %v707_v26  ;;  %v784_v31 = vsub.f32 (!%p187_p2), %v694_v25, %v707_v26 }
   0xa   : > { %1322 = vmatpush3.bf16.msra.mxu0 (!%p187_p2), %v1321_v6  ;;  %v314_v9 = vand.u32 (!%p187_p2), 4294901760, %v313_v7  ;;  %v321_v10 = vand.u32 (!%p187_p2), 4294901760, %v320_v8  ;;  %v1327_v23 = vpack.c.bf16 (!%p187_p2), %v320_v8, %v313_v7  ;;  %1295 = vmatprep.subr.mxu1 (!%p187_p2), %v1381_v5 }
   0xb   : > { %1323 = vmatprep.subr.bf16.mxu0 (!%p187_p2), %v1379_v2  ;;  %v785_v34 = vand.u32 (!%p187_p2), 4294901760, %v784_v31 }
   0xc   : > { %v315_v13 = vsub.f32 (!%p187_p2), %v313_v7, %v314_v9  ;;  %v322_v14 = vsub.f32 (!%p187_p2), %v320_v8, %v321_v10  ;;  %v1333_v24 = vpack.c.bf16 (!%p187_p2), %v321_v10, %v314_v9 }
   0xd   : > { %s1488_s19 = smov (!%p212_p3, %s1207_s19), 2  ;;  %v786_v37 = vsub.f32 %v784_v31, %v785_v34 }
   0xe   : > { %s1212_s24 = sshll.u32 %s1488_s19, 3  ;;  %v316_v17 = vand.u32 4294901760, %v315_v13  ;;  %v323_v18 = vand.u32 4294901760, %v322_v14 }
   0xf   : > { %s215_s27 = scalar_lea.vmem %s1481_s0, %s1212_s24  ;;  %v787_v40 = vand.u32 4294901760, %v786_v37  ;;  %s219_s11 = scalar_lea.vmem %s1486_s5, %s1212_s24 }
  0x10   : > { %v220_v11 = vld [vmem:[%s215_s27] sm:$0xff]  ;;  %v1324_v21 = vpack.c.bf16 %v323_v18, %v316_v17 }
  0x11   : > { %v232_v12 = vsel %vm230_vm1, %v220_v11, 0 }
  0x12   : > { %v301_v15 = vand.u32 4294901760, %v232_v12 }
  0x14   : > { %v302_v16 = vsub.f32 %v232_v12, %v301_v15 }
  0x16   : > { %v303_v19 = vand.u32 4294901760, %v302_v16 }
  0x18   : > { %v304_v20 = vsub.f32 %v302_v16, %v303_v19 }
  0x1a   : > { %v305_v22 = vand.u32 4294901760, %v304_v20 }
  0x1c   : > { %1253 = vmatmul.mubr.f32.vlgmr.msra.gmra.mrb[0].mxu0 %v305_v22 }
  0x1d   : > { %1325 = vmatpush3.bf16.msra.mxu0 %v1324_v21  ;;  %1259 = vmatprep.mubr.msk.f32.mxu0 %vm1380_vm0, %v1381_v5 }
  0x1e   : > { %1326 = vmatprep.subr.bf16.mxu0 %v1379_v2 }
  0x24   : > { %1260 = vmatmul.mubr.f32.vlgmr.msra.gmra.mrb[0].mxu0 %v301_v15 }
  0x25   : > { %1328 = vmatpush3.bf16.msra.mxu0 %v1327_v23  ;;  %1266 = vmatprep.mubr.msk.f32.mxu0 %vm1380_vm0, %v1381_v5 }
  0x26   : > { %1329 = vmatprep.subr.bf16.mxu0 %v1379_v2 }
  0x2c   : > { %1267 = vmatmul.mubr.f32.vlgmr.msra.gmra.mrb[0].mxu0 %v302_v16 }
  0x2d   : > { %1331 = vmatpush3.bf16.msra.mxu0 %v1321_v6  ;;  %1273 = vmatprep.mubr.msk.f32.mxu0 %vm1380_vm0, %v1381_v5 }
  0x2e   : > { %1332 = vmatprep.subr.bf16.mxu0 %v1379_v2 }
  0x34   : > { %1274 = vmatmul.mubr.f32.vlgmr.msra.gmra.mrb[0].mxu0 %v303_v19 }
  0x35   : > { %1334 = vmatpush3.bf16.msra.mxu0 %v1333_v24  ;;  %1280 = vmatprep.mubr.msk.f32.mxu0 %vm1380_vm0, %v1381_v5 }
  0x36   : > { %1335 = vmatprep.subr.bf16.mxu0 %v1379_v2 }
  0x3c   : > { %1281 = vmatmul.mubr.f32.vlgmr.msra.gmra.mrb[0].mxu0 %v301_v15 }
  0x3d   : > { %1337 = vmatpush3.bf16.msra.mxu0 %v1321_v6  ;;  %1287 = vmatprep.mubr.msk.f32.mxu0 %vm1380_vm0, %v1381_v5 }
  0x44   : > { %1288 = vmatmul.mubr.f32.vlgmr.msra.gmra.mrb[0].mxu0 %v301_v15 }
 0x117   : > { %v689_v28 = vpop.f32.mrb[0].mxu0 }
 0x118   : > { %v1338_v29 = vadd.f32 %v1214_v27, %v689_v28  ;;  %v1289_v30 = vpop.f32.mrb[1].mxu0 }
 0x11a   : > { %v693_v32 = vmax.f32 %v1338_v29, 0.0 }
 0x11c   : > { %v704_v33 = vsel %vm702_vm2, %v693_v32, 0 }
 0x11d   : > { %v772_v35 = vand.u32 4294901760, %v704_v33 }
 0x11f   : > { %v773_v36 = vsub.f32 %v704_v33, %v772_v35 }
 0x121   : > { %v774_v38 = vand.u32 4294901760, %v773_v36 }
 0x123   : > { %v775_v39 = vsub.f32 %v773_v36, %v774_v38 }
 0x125   : > { %v776_v41 = vand.u32 4294901760, %v775_v39 }
 0x127   : > { %1293 = vmatmul.mubr.f32.vlgmr.msra.gmra.mrb[0].mxu1 %v776_v41 }
 0x128   : > { %1296 = vmatpush3.msra.mxu1 %v787_v40  ;;  %1297 = vmatprep.mubr.msk.f32.mxu1 %vm1380_vm0, %v1381_v5 }
 0x129   : > { %1300 = vmatprep.subr.mxu1 %v1381_v5 }
 0x12f   : > { %1298 = vmatmul.mubr.f32.vlgmr.msra.gmra.mrb[0].mxu1 %v772_v35 }
 0x130   : > { %1301 = vmatpush3.msra.mxu1 %v784_v31  ;;  %1302 = vmatprep.mubr.msk.f32.mxu1 %vm1380_vm0, %v1381_v5 }
 0x131   : > { %1305 = vmatprep.subr.mxu1 %v1381_v5 }
 0x137   : > { %1303 = vmatmul.mubr.f32.vlgmr.msra.gmra.mrb[0].mxu1 %v773_v36 }
 0x138   : > { %1306 = vmatpush3.msra.mxu1 %v707_v26  ;;  %1307 = vmatprep.mubr.msk.f32.mxu1 %vm1380_vm0, %v1381_v5 }
 0x139   : > { %1310 = vmatprep.subr.mxu1 %v1381_v5 }
 0x13f   : > { %1308 = vmatmul.mubr.f32.vlgmr.msra.gmra.mrb[0].mxu1 %v774_v38 }
 0x140   : > { %1311 = vmatpush3.msra.mxu1 %v785_v34  ;;  %1312 = vmatprep.mubr.msk.f32.mxu1 %vm1380_vm0, %v1381_v5 }
 0x141   : > { %1315 = vmatprep.subr.mxu1 %v1381_v5 }
 0x147   : > { %1313 = vmatmul.mubr.f32.vlgmr.msra.gmra.mrb[0].mxu1 %v772_v35 }
 0x148   : > { %1316 = vmatpush3.msra.mxu1 %v707_v26  ;;  %1317 = vmatprep.mubr.msk.f32.mxu1 %vm1380_vm0, %v1381_v5 }
 0x14f   : > { %1318 = vmatmul.mubr.f32.vlgmr.msra.gmra.mrb[0].mxu1 %v772_v35 }
 0x222   : > { %v1148_v43 = vpop.f32.mrb[0].mxu1 }
 0x223   : > { %v1339_v44 = vadd.f32 %v1215_v42, %v1148_v43  ;;  %v1319_v45 = vpop.f32.mrb[1].mxu1 }
 0x225   : > { %1153 = vst.msk [vmem:[%s219_s11] sm:$0xff] %vm1152_vm3, %v1339_v44 }
 0x226 PF: > { %s15_s18 = sadd.s32 1, %s1377_s18  }
 0x227   : > { %p12_p4 = scmp.ge.s32.totalorder %s15_s18, 5  }
 0x229   :  { %14 = sbr.rel (!%p12_p4) target bundleno = 1 (0x1), region = 70 }

</bundles_post_ra>
